<compile_context>
chip_gen: v5e
topology: v5e:2x2
jax: 0.10.0
libtpu: 0.0.40
codegen_flags: <defaults>
</compile_context>

<pallas_src>
import functools

import jax
import jax.numpy as jnp
from jax import lax
from jax.experimental import pallas as pl
from jax.experimental.pallas import tpu as pltpu

_EPS = 1e-8                    # matches torch.nn.functional.cosine_similarity
_EPS2 = _EPS * _EPS            # 1e-16, still a normal float32
_SMALL_INPUT_BYTES = 512 * 1024   # below this a fused XLA reduction wins
_MAX_TILE_ELEMS = 2 * 1024 * 1024  # ~8 MiB of f32 rows; diminishing returns beyond


def _round_up(x, m):
    return (x + m - 1) // m * m


def _vmem_capacity_bytes():
    """Physical VMEM of the local TPU (64 MiB v7x, 128 MiB v5e/v6e)."""
    try:
        info = pltpu.get_tpu_info()
        cap = int(getattr(info, "vmem_capacity_bytes", 0) or 0)
        if cap > 0:
            return cap
    except Exception:
        pass
    return 128 * 1024 * 1024   # conservative-safe fallback


def _cosine_tile_kernel(f1_ref, f2_ref, partial_ref, *, n_rows, tile_rows):
    """One (TN, D) row tile -> lane-dense (1,8,128) block holding sum(1 - cos)."""
    x1 = f1_ref[...].astype(jnp.float32)
    x2 = f2_ref[...].astype(jnp.float32)

    dot = jnp.sum(x1 * x2, axis=1, keepdims=True)   # (TN, 1)
    s1 = jnp.sum(x1 * x1, axis=1, keepdims=True)    # (TN, 1)
    s2 = jnp.sum(x2 * x2, axis=1, keepdims=True)    # (TN, 1)

    # max(sqrt(s), eps) == sqrt(max(s, eps^2))  -> a single EUP rsqrt per row.
    denom_inv = lax.rsqrt(jnp.maximum(s1, _EPS2) * jnp.maximum(s2, _EPS2))
    loss = 1.0 - dot * denom_inv                     # (TN, 1) per-row loss

    if n_rows % tile_rows != 0:
        # Ragged tail: rows >= N of the last tile read the DMA overhang
        # (unspecified data); zero their loss so the partial sum stays exact
        # without any jnp.pad HBM round-trip in the wrapper.
        row = tile_rows * pl.program_id(0) + lax.broadcasted_iota(
            jnp.int32, (tile_rows, 1), 0)
        loss = jnp.where(row < n_rows, loss, 0.0)

    tile_sum = jnp.sum(loss)                         # scalar partial
    partial_ref[...] = jnp.broadcast_to(tile_sum, partial_ref.shape).astype(
        jnp.float32)


def _jnp_reference(features1, features2):
    """Per-row loss (1 - cosine similarity), pure jnp."""
    x1 = features1.astype(jnp.float32)
    x2 = features2.astype(jnp.float32)
    dot = jnp.sum(x1 * x2, axis=1)
    n1 = jnp.sqrt(jnp.sum(x1 * x1, axis=1))
    n2 = jnp.sqrt(jnp.sum(x2 * x2, axis=1))
    sim = dot / (jnp.maximum(n1, _EPS) * jnp.maximum(n2, _EPS))
    return 1.0 - sim


def cosine_similarity_loss(features1, features2, reduction="mean", *,
                           block_rows=None, force_pallas=False):
    """Pallas implementation of CosineSimilarityLoss (dim=1)."""
    assert features1.shape == features2.shape
    assert features1.ndim == 2, "expected (N, D) feature batches"
    n, d = features1.shape

    if reduction == "none":
        # TODO(synk): per-row 'none' reduction is not wired into the Pallas
        # kernel (needs a per-row output layout); plain jnp path used instead.
        return _jnp_reference(features1, features2)
    if reduction not in ("mean", "sum"):
        raise ValueError(f"unknown reduction: {reduction!r}")

    itemsize = jnp.dtype(features1.dtype).itemsize
    if not force_pallas and 2 * n * d * itemsize < _SMALL_INPUT_BYTES:
        # Tiny problems are pure launch/step overhead; let XLA fuse them.
        loss = _jnp_reference(features1, features2)
        return loss.mean() if reduction == "mean" else loss.sum()

    # ---- generation-aware row-tile selection --------------------------------
    # Per-element VMEM cost: 2 inputs x 2 pipeline buffers (4*itemsize) plus
    # ~3 full-tile f32 temporaries (12 B).  Keep total at <= ~60% of physical
    # VMEM so both v7x (64 MiB) and v5e/v6e (128 MiB) get the right tiling.
    vmem_cap = _vmem_capacity_bytes()
    elems_budget = (int(0.6 * vmem_cap)) // (4 * itemsize + 12)
    elems_budget = min(elems_budget, _MAX_TILE_ELEMS)

    if elems_budget // d < 8:
        # Degenerate: even a minimum 8-row tile would not fit the VMEM budget
        # (absurdly large D); safer to let XLA stream it than to OOM VMEM.
        loss = _jnp_reference(features1, features2)
        return loss.mean() if reduction == "mean" else loss.sum()

    if block_rows is None:
        tn = max(8, (elems_budget // d) // 8 * 8)
    else:
        tn = max(8, _round_up(block_rows, 8))
    tn = min(tn, _round_up(n, 8))          # never larger than the (padded) batch

    num_tiles = (n + tn - 1) // tn

    needed_vmem = 4 * tn * d * itemsize + 3 * tn * d * 4 + (4 << 20)
    vmem_limit = int(max(min(vmem_cap - (4 << 20), needed_vmem), 16 << 20))

    kernel = functools.partial(_cosine_tile_kernel, n_rows=n, tile_rows=tn)

    partials = pl.pallas_call(
        kernel,
        out_shape=jax.ShapeDtypeStruct((num_tiles, 8, 128), jnp.float32),
        grid_spec=pltpu.PrefetchScalarGridSpec(
            num_scalar_prefetch=0,
            grid=(num_tiles,),
            in_specs=[
                pl.BlockSpec((tn, d), lambda i: (i, 0)),
                pl.BlockSpec((tn, d), lambda i: (i, 0)),
            ],
            out_specs=pl.BlockSpec((1, 8, 128), lambda i: (i, 0, 0)),
        ),
        compiler_params=pltpu.CompilerParams(
            # "parallel" lets the runtime shard the row axis across TCs where
            # supported (verify with a trace on v7x; no serial accumulator here).
            dimension_semantics=("parallel",),
            vmem_limit_bytes=vmem_limit,
        ),
        cost_estimate=pl.CostEstimate(
            flops=6 * n * d,
            transcendentals=n,
            bytes_accessed=2 * n * d * itemsize + num_tiles * 8 * 128 * 4,
        ),
    )(features1, features2)

    # Each tile already holds sum_i (1 - sim_i) over its valid rows only.
    total_loss = jnp.sum(partials[:, 0, 0])
    if reduction == "mean":
        return total_loss / n
    return total_loss


if __name__ == "__main__":
    key = jax.random.PRNGKey(0)
    k1, k2, k3, k4 = jax.random.split(key, 4)

    # Case 1: small (N, D) feature batch, single row tile, forced Pallas path.
    N1, D1 = 8, 32
    a1 = jax.random.normal(k1, (N1, D1), dtype=jnp.float32)
    b1 = jax.random.normal(k2, (N1, D1), dtype=jnp.float32)
    out1 = jax.block_until_ready(
        cosine_similarity_loss(a1, b1, force_pallas=True))
    ref1 = jax.block_until_ready(jnp.mean(_jnp_reference(a1, b1)))
    assert jnp.allclose(out1, ref1, atol=1e-5, rtol=1e-5), (out1, ref1)

    # Case 2: ragged N (in-kernel tail masking, no jnp.pad), multi-tile grid.
    N2, D2 = 300, 192
    a2 = jax.random.normal(k3, (N2, D2), dtype=jnp.float32)
    b2 = jax.random.normal(k4, (N2, D2), dtype=jnp.float32)
    out2 = jax.block_until_ready(
        cosine_similarity_loss(a2, b2, block_rows=128, force_pallas=True))
    ref2 = jax.block_until_ready(jnp.mean(_jnp_reference(a2, b2)))
    assert jnp.allclose(out2, ref2, atol=1e-5, rtol=1e-5), (out2, ref2)

    # reduction='sum' path: kernel accumulates sum(1 - sim) directly.
    out3 = jax.block_until_ready(
        cosine_similarity_loss(a2, b2, reduction="sum", block_rows=128,
                               force_pallas=True))
    ref3 = jax.block_until_ready(jnp.sum(_jnp_reference(a2, b2)))
    assert jnp.allclose(out3, ref3, atol=1e-4, rtol=1e-5), (out3, ref3)

    # Auto (generation-aware) tile selection on the same ragged input.
    out4 = jax.block_until_ready(
        cosine_similarity_loss(a2, b2, force_pallas=True))
    assert jnp.allclose(out4, ref2, atol=1e-5, rtol=1e-5), (out4, ref2)

    print("KERNEL_OK")
</pallas_src>

<mosaic_0001>
module attributes {stable_mosaic.version = 11 : i64} {
  func.func @_cosine_tile_kernel(%arg0: i32, %arg1: memref<8x32xf32, #tpu.memory_space<vmem>>, %arg2: memref<8x32xf32, #tpu.memory_space<vmem>>, %arg3: memref<1x8x128xf32, #tpu.memory_space<vmem>>) attributes {dimension_semantics = [#tpu.dimension_semantics<parallel>], iteration_bounds = array<i64: 1>, scalar_prefetch = 0 : i64, scratch_operands = 0 : i64, tpu.core_type = #tpu.core_type<tc>, window_params = [{transform_indices = @transform_0, window_bounds = array<i64: 8, 32>}, {transform_indices = @transform_1, window_bounds = array<i64: 8, 32>}, {transform_indices = @transform_2, window_bounds = array<i64: 1, 8, 128>}]} {
    %c0 = arith.constant 0 : index
    %c0_0 = arith.constant 0 : index
    %0 = vector.load %arg1[%c0, %c0_0] : memref<8x32xf32, #tpu.memory_space<vmem>>, vector<8x32xf32>
    %c0_1 = arith.constant 0 : index
    %c0_2 = arith.constant 0 : index
    %1 = vector.load %arg2[%c0_1, %c0_2] : memref<8x32xf32, #tpu.memory_space<vmem>>, vector<8x32xf32>
    %2 = arith.mulf %0, %1 : vector<8x32xf32>
    %cst = arith.constant dense<0.000000e+00> : vector<8xf32>
    %3 = vector.multi_reduction <add>, %2, %cst [1] : vector<8x32xf32> to vector<8xf32>
    %4 = vector.shape_cast %3 : vector<8xf32> to vector<8x1xf32>
    %5 = arith.mulf %0, %0 : vector<8x32xf32>
    %cst_3 = arith.constant dense<0.000000e+00> : vector<8xf32>
    %6 = vector.multi_reduction <add>, %5, %cst_3 [1] : vector<8x32xf32> to vector<8xf32>
    %7 = vector.shape_cast %6 : vector<8xf32> to vector<8x1xf32>
    %8 = arith.mulf %1, %1 : vector<8x32xf32>
    %cst_4 = arith.constant dense<0.000000e+00> : vector<8xf32>
    %9 = vector.multi_reduction <add>, %8, %cst_4 [1] : vector<8x32xf32> to vector<8xf32>
    %10 = vector.shape_cast %9 : vector<8xf32> to vector<8x1xf32>
    %cst_5 = arith.constant 1.000000e-16 : f32
    %11 = vector.broadcast %cst_5 : f32 to vector<8x1xf32>
    %12 = arith.maximumf %7, %11 : vector<8x1xf32>
    %cst_6 = arith.constant 1.000000e-16 : f32
    %13 = vector.broadcast %cst_6 : f32 to vector<8x1xf32>
    %14 = arith.maximumf %10, %13 : vector<8x1xf32>
    %15 = arith.mulf %12, %14 : vector<8x1xf32>
    %16 = math.rsqrt %15 : vector<8x1xf32>
    %17 = arith.mulf %4, %16 : vector<8x1xf32>
    %cst_7 = arith.constant 1.000000e+00 : f32
    %18 = vector.broadcast %cst_7 : f32 to vector<8x1xf32>
    %19 = arith.subf %18, %17 : vector<8x1xf32>
    %20 = vector.shape_cast %19 : vector<8x1xf32> to vector<1x8x1xf32>
    %cst_8 = arith.constant dense<0.000000e+00> : vector<1xf32>
    %21 = vector.multi_reduction <add>, %20, %cst_8 [1, 2] : vector<1x8x1xf32> to vector<1xf32>
    %22 = vector.shape_cast %21 : vector<1xf32> to vector<1x1x1xf32>
    %23 = vector.extract %22[0, 0, 0] : f32 from vector<1x1x1xf32>
    %24 = vector.broadcast %23 : f32 to vector<1x8x128xf32>
    %c0_9 = arith.constant 0 : index
    %c0_10 = arith.constant 0 : index
    %c0_11 = arith.constant 0 : index
    %25 = vector.load %arg3[%c0_9, %c0_10, %c0_11] : memref<1x8x128xf32, #tpu.memory_space<vmem>>, vector<1x8x128xf32>
    tpu.vector_store %arg3[%c0_9, %c0_10, %c0_11], %24 {strides = array<i32>} : memref<1x8x128xf32, #tpu.memory_space<vmem>>, vector<1x8x128xf32>,
    return
  }
  func.func @transform_0(%arg0: i32) -> (i32, i32) {
    %c0_i32 = arith.constant 0 : i32
    %c0_i32_0 = arith.constant 0 : i32
    return %arg0, %c0_i32 : i32, i32
  }
  func.func @transform_1(%arg0: i32) -> (i32, i32) {
    %c0_i32 = arith.constant 0 : i32
    %c0_i32_0 = arith.constant 0 : i32
    return %arg0, %c0_i32 : i32, i32
  }
  func.func @transform_2(%arg0: i32) -> (i32, i32, i32) {
    %c0_i32 = arith.constant 0 : i32
    %c0_i32_0 = arith.constant 0 : i32
    %c0_i32_1 = arith.constant 0 : i32
    return %arg0, %c0_i32, %c0_i32_0 : i32, i32, i32
  }
}

</mosaic_0001>

<bundles_post_ra>
// kernel: tpu_custom_call.1
= control target key start
LH: loop header
LB: loop body
LE: loop exit
PB: predicated region body
PF: predicated region fallthrough
CT: control target
= control target key end

     0   :  { %7 = vsyncpa [#allocation3], 0  ;;  %s213_s0 = inlined_call_operand.hbm [shape: f32[8,32], index: 0, kind: input, shape index: {}]   ;;  %s214_s1 = inlined_call_operand.hbm [shape: f32[8,32], index: 1, kind: input, shape index: {}]   ;;  %s215_s2 = inlined_call_operand.hbm [shape: f32[1,8,128], index: 2, kind: output, shape index: {}]  }
   0x1   :  { %8 = vsyncpa [#allocation6], 0 }
   0x2   :  { %9 = vsyncpa [#allocation4], 0  ;;  %s15_s11 = sshll.u32 %s213_s0, 4  ;;  %s186_s12 = smov [#allocation2]   ;;  %s16_s11 = int_to_ptr.hbm [resolvable:$true] %s15_s11 }
   0x3   :  { %s17_s13 = sshll.u32 %s186_s12, 4  ;;  %s26_s16 = sshll.u32 %s214_s1, 4  ;;  %s18_s13 = int_to_ptr.vmem [resolvable:$true] %s17_s13  ;;  %s27_s16 = int_to_ptr.hbm [resolvable:$true] %s26_s16 }
   0x4   :  { %20 = dma.hbm_to_vmem [thread:$0]  %s16_s11, 128, %s18_s13, [#allocation3]  }
   0x5   :  { %s187_s17 = smov [#allocation5]  }
   0x6   :  { %s28_s18 = sshll.u32 %s187_s17, 4  ;;  %s29_s18 = int_to_ptr.vmem [resolvable:$true] %s28_s18 }
   0x7   :  { %31 = dma.hbm_to_vmem [thread:$0]  %s27_s16, 128, %s29_s18, [#allocation6]  }
   0x8   :  { %180 = dma.done.wait [#allocation3], 128  }
   0x9   :  { %181 = vsyncadd [#allocation3], 4294967168 }
   0xa   :  { %182 = dma.done.wait [#allocation6], 128  }
   0xb   :  { %183 = vsyncadd [#allocation6], 4294967168  ;;  %v40_v0 = vld [vmem:[#allocation2] sm:$0xff]  ;;  %vm43_vm0 = vcmask 261120   ;;  %v41_v1 = vld [vmem:[#allocation5] sm:$0xff]  ;;  %vm70_vm4 = vcmask 7168  }
   0xc   :  { %v47_v2 = vmul.f32 %v40_v0, %v40_v0  ;;  %v42_v3 = vmul.f32 %v41_v1, %v40_v0  ;;  %v51_v6 = vmul.f32 %v41_v1, %v41_v1  ;;  %s188_s0 = smov [#allocation7]   ;;  %s90_s21 = sshll.u32 %s215_s2, 4  ;;  %s91_s21 = int_to_ptr.hbm [resolvable:$true] %s90_s21 }
   0xd   :  { %s88_s1 = sshll.u32 %s188_s0, 4  ;;  %s89_s1 = int_to_ptr.vmem [resolvable:$true] %s88_s1 }
   0xe   :  { %v48_v4 = vsel %vm43_vm0, %v47_v2, 0.0  ;;  %v44_v5 = vsel %vm43_vm0, %v42_v3, 0.0  ;;  %v52_v7 = vsel %vm43_vm0, %v51_v6, 0.0 }
   0xf   :  { %49 = vadd.xlane.f32.xlu0 %v48_v4  ;;  %45 = vadd.xlane.f32.xlu1 %v44_v5 }
  0x17   :  { %53 = vadd.xlane.f32.xlu0 %v52_v7 }
  0x82   :  { %v50_v8 = vpop.xlane.xlu0 %49  ;;  %v46_v19 = vpop.xlane.xlu1 %45 }
  0x83   :  { %v55_v10 = vmax.f32 %v50_v8, 1e-16 }
  0x8a   :  { %v54_v9 = vpop.xlane.xlu0 %53 }
  0x8b   :  { %v56_v11 = vmax.f32 %v54_v9, 1e-16 }
  0x8d   :  { %v57_v12 = vmul.f32 %v56_v11, %v55_v10 }
  0x8f   :  { %106 = vrsqrt.f32 %v57_v12  ;;  %vm64_vm2 = vweird.f32 %v57_v12 }
  0x95   :  { %v107_v13 = vpop.eup %106 }
  0x96   :  { %v59_v14 = vmul.f32 %v107_v13, %v57_v12  ;;  %vm65_vm1 = vweird.f32 %v107_v13 }
  0x97   :  { %vm66_vm3 = vmor %vm64_vm2, %vm65_vm1 }
  0x98   :  { %v60_v15 = vmul.f32 %v107_v13, %v59_v14 }
  0x9a   :  { %v61_v16 = vmul.f32 0.5, %v60_v15 }
  0x9c   :  { %v62_v17 = vsub.f32 1.5, %v61_v16 }
  0x9e   :  { %v63_v18 = vmul.f32 %v107_v13, %v62_v17 }
  0xa0   :  { %v67_v20 = vsel %vm66_vm3, %v107_v13, %v63_v18 }
  0xa1   :  { %v68_v21 = vmul.f32 %v67_v20, %v46_v19 }
  0xa3   :  { %v69_v22 = vsub.f32 1.0, %v68_v21 }
  0xa5   :  { %v71_v23 = vsel %vm70_vm4, %v69_v22, 0.0 }
  0xa6   :  { %72 = vadd.xlane.f32.xlu1 %v71_v23 }
 0x119   :  { %v73_v24 = vpop.xlane.xlu1 %72 }
 0x11a   :  { %v74_v25 = vrot.slane %v73_v24, 4 }
 0x11c   :  { %v75_v26 = vadd.f32 %v74_v25, %v73_v24 }
 0x11e   :  { %v76_v27 = vrot.slane %v75_v26, 2 }
 0x120   :  { %v77_v28 = vadd.f32 %v76_v27, %v75_v26 }
 0x122   :  { %v78_v29 = vrot.slane %v77_v28, 1 }
 0x124   :  { %v79_v30 = vadd.f32 %v78_v29, %v77_v28 }
 0x126   :  { %101 = vpush %v79_v30 }
 0x157   :  { %s102_s22 = spop %101 }
 0x158   :  { %v81_v31 = vstv %s102_s22 }
 0x159   :  { %82 = vst [vmem:[#allocation7] sm:$0xff] %v81_v31 }
 0x15a   :  { %93 = dma.vmem_to_hbm [thread:$0]  %s89_s1, 128, %s91_s21, [#allocation4]  }
 0x15b   :  { %184 = dma.done.wait [#allocation4], 128  }
 0x15c   :  { %185 = vsyncadd [#allocation4], 4294967168 }
 0x15d   :  { %98 = vsyncpa [#allocation3], 1 }
 0x15e   :  { %99 = vsyncpa [#allocation6], 1 }
 0x15f   :  { %100 = vsyncpa [#allocation4], 1 }

</bundles_post_ra>
